<compile_context>
chip_gen: v5e
topology: v5e:2x2
jax: 0.10.0
libtpu: 0.0.40
codegen_flags: <defaults>
</compile_context>

<pallas_src>
import jax
import jax.numpy as jnp
from jax import lax
from jax.experimental import pallas as pl
from jax.experimental.pallas import tpu as pltpu


def _make_kernel(chunk, n_chunks):
    """Kernel over one (3, TB) batch tile; TB = chunk * n_chunks lanes."""

    def kernel(xT_ref, w1_ref, b1_ref, w2_ref, b2_ref, w3_ref, b3_ref, o_ref):
        # xT_ref: (3, TB) VMEM, batch on lanes.
        # w*/b*_ref: flattened 1-D f32 in SMEM (torch [out, in] row-major).
        # o_ref: (2, TB) VMEM.
        def body(c, carry):
            off = pl.multiple_of(c * chunk, chunk)
            x0 = xT_ref[0:1, pl.ds(off, chunk)]
            x1 = xT_ref[1:2, pl.ds(off, chunk)]
            x2 = xT_ref[2:3, pl.ds(off, chunk)]

            # l1 + ReLU : 6 rows of (1, chunk), pure VPU scalar-broadcast FMAs.
            h1 = []
            for j in range(6):
                acc = w1_ref[3 * j + 0] * x0
                acc = acc + w1_ref[3 * j + 1] * x1
                acc = acc + w1_ref[3 * j + 2] * x2
                h1.append(jnp.maximum(acc + b1_ref[j], 0.0))

            # l2 + ReLU : 3 rows.
            h2 = []
            for j in range(3):
                acc = w2_ref[6 * j + 0] * h1[0]
                for k in range(1, 6):
                    acc = acc + w2_ref[6 * j + k] * h1[k]
                h2.append(jnp.maximum(acc + b2_ref[j], 0.0))

            # l3 : 2 logit rows.
            logits = []
            for j in range(2):
                acc = w3_ref[3 * j + 0] * h2[0]
                acc = acc + w3_ref[3 * j + 1] * h2[1]
                acc = acc + w3_ref[3 * j + 2] * h2[2]
                logits.append(acc + b3_ref[j])
            l0, l1 = logits

            # Reduction-free 2-way softmax (elementwise max/exp on VPU/EUP).
            m = jnp.maximum(l0, l1)
            e0 = jnp.exp(l0 - m)
            e1 = jnp.exp(l1 - m)
            s = e0 + e1
            r = pl.reciprocal(s, approx=True)      # EUP slot
            inv = r * (2.0 - s * r)                # one Newton step -> ~f32 accurate

            # Single coalesced (2, chunk) store.
            o_ref[:, pl.ds(off, chunk)] = jnp.concatenate(
                [e0 * inv, e1 * inv], axis=0)
            return carry

        lax.fori_loop(0, n_chunks, body, 0)

    return kernel


def ffn_forward_t(xT, params, tb=32768):
    """Optimized entry point. xT: (3, B) f32. Returns (2, B) probabilities."""
    (w1, b1), (w2, b2), (w3, b3) = params
    B = xT.shape[1]

    # Lane chunk (inner loop) and batch tile (BlockSpec block), both *128.
    chunk = min(2048, pl.cdiv(B, 128) * 128)
    tb = max(chunk, (tb // chunk) * chunk)          # keep tb a multiple of chunk
    TB = min(tb, pl.cdiv(B, chunk) * chunk)
    num_steps = pl.cdiv(B, TB)                      # ragged last tile, no padding
    n_chunks = TB // chunk

    flat = [
        w1.reshape(-1).astype(jnp.float32), b1.reshape(-1).astype(jnp.float32),
        w2.reshape(-1).astype(jnp.float32), b2.reshape(-1).astype(jnp.float32),
        w3.reshape(-1).astype(jnp.float32), b3.reshape(-1).astype(jnp.float32),
    ]
    smem = lambda: pl.BlockSpec(memory_space=pltpu.MemorySpace.SMEM)

    return pl.pallas_call(
        _make_kernel(chunk, n_chunks),
        out_shape=jax.ShapeDtypeStruct((2, B), jnp.float32),
        grid=(num_steps,),
        in_specs=[
            pl.BlockSpec((3, TB), lambda i: (0, i)),    # x^T batch tile (lane-dense)
            smem(), smem(), smem(), smem(), smem(), smem(),
        ],
        out_specs=pl.BlockSpec((2, TB), lambda i: (0, i)),
        compiler_params=pltpu.CompilerParams(
            dimension_semantics=("parallel",)),
    )(xT.astype(jnp.float32), *flat)


def ffn_forward(x, params, tb=32768):
    """PyTorch-convention wrapper: x (B, 3) -> (B, 2).

    Does exactly one transpose on each side; prefer ffn_forward_t with data
    already in the transposed (3, B)/(2, B) convention to avoid them.
    """
    return ffn_forward_t(jnp.asarray(x, jnp.float32).T, params, tb=tb).T


def init_params(key):
    # Shapes from FFN.__init__: Linear(3,6), Linear(6,3), Linear(3,2).
    # Torch layout: W [out, in], b [out].
    def linear(key, fan_in, fan_out):
        kw, kb = jax.random.split(key)
        bound = 1.0 / jnp.sqrt(fan_in)
        w = jax.random.uniform(kw, (fan_out, fan_in), jnp.float32, -bound, bound)
        b = jax.random.uniform(kb, (fan_out,), jnp.float32, -bound, bound)
        return w, b

    k1, k2, k3 = jax.random.split(key, 3)
    return linear(k1, 3, 6), linear(k2, 6, 3), linear(k3, 3, 2)


def ffn_reference(x, params):
    # Pure-JAX reference (standard row-major layout).
    (w1, b1), (w2, b2), (w3, b3) = params
    h = jnp.maximum(x @ w1.T + b1, 0.0)
    h = jnp.maximum(h @ w2.T + b2, 0.0)
    logits = h @ w3.T + b3
    return jax.nn.softmax(logits, axis=-1)


if __name__ == "__main__":
    key = jax.random.PRNGKey(0)
    params = init_params(key)

    # Same input as the PyTorch script: x of shape [5, 3].
    x = jnp.array(
        [[0, 0, 1], [1, 1, 1], [1, 0, 0], [0, 1, 0], [1, 0, 1]],
        dtype=jnp.float32,
    )
    ref = ffn_reference(x, params)

    # Optimized transposed path (no wrapper pad / transpose passes).
    out_t = jax.block_until_ready(ffn_forward_t(x.T, params))
    assert out_t.shape == (2, 5)
    assert jnp.allclose(out_t.T, ref, atol=1e-5, rtol=1e-5)
    assert jnp.allclose(jnp.sum(out_t, axis=0), jnp.ones((5,)), atol=1e-5)

    # PyTorch-convention wrapper.
    out = jax.block_until_ready(ffn_forward(x, params))
    assert out.shape == (5, 2)
    assert jnp.allclose(out, ref, atol=1e-5, rtol=1e-5)

    # Larger batch: multi-step grid (3 steps of TB=2048) with a ragged last
    # tile, exercising the no-padding path and the inner chunk loop.
    xb = jax.random.uniform(jax.random.PRNGKey(1), (5000, 3), jnp.float32)
    out_b = jax.block_until_ready(ffn_forward(xb, params, tb=2048))
    ref_b = ffn_reference(xb, params)
    assert out_b.shape == (5000, 2)
    assert jnp.allclose(out_b, ref_b, atol=1e-5, rtol=1e-5)

    print("KERNEL_OK")
</pallas_src>

<mosaic_0001>
module attributes {stable_mosaic.version = 11 : i64} {
  func.func @kernel(%arg0: i32, %arg1: memref<3x128xf32, #tpu.memory_space<vmem>>, %arg2: memref<18xf32, #tpu.memory_space<smem>>, %arg3: memref<6xf32, #tpu.memory_space<smem>>, %arg4: memref<18xf32, #tpu.memory_space<smem>>, %arg5: memref<3xf32, #tpu.memory_space<smem>>, %arg6: memref<6xf32, #tpu.memory_space<smem>>, %arg7: memref<2xf32, #tpu.memory_space<smem>>, %arg8: memref<2x128xf32, #tpu.memory_space<vmem>>) attributes {dimension_semantics = [#tpu.dimension_semantics<parallel>], iteration_bounds = array<i64: 1>, scalar_prefetch = 0 : i64, scratch_operands = 0 : i64, tpu.core_type = #tpu.core_type<tc>, window_params = [{transform_indices = @transform_0, window_bounds = array<i64: 3, 128>}, {transform_indices = @transform_1, window_bounds = array<i64: 18>}, {transform_indices = @transform_2, window_bounds = array<i64: 6>}, {transform_indices = @transform_3, window_bounds = array<i64: 18>}, {transform_indices = @transform_4, window_bounds = array<i64: 3>}, {transform_indices = @transform_5, window_bounds = array<i64: 6>}, {transform_indices = @transform_6, window_bounds = array<i64: 2>}, {transform_indices = @transform_7, window_bounds = array<i64: 2, 128>}]} {
    %c0_i32 = arith.constant 0 : i32
    %c128_i32 = arith.constant 128 : i32
    %0 = arith.muli %c0_i32, %c128_i32 : i32
    %1 = tpu.assume_multiple %0, 128 : i32
    %c0 = arith.constant 0 : index
    %2 = arith.index_cast %1 : i32 to index
    %3 = vector.load %arg1[%c0, %2] : memref<3x128xf32, #tpu.memory_space<vmem>>, vector<1x128xf32>
    %c1 = arith.constant 1 : index
    %4 = arith.index_cast %1 : i32 to index
    %5 = vector.load %arg1[%c1, %4] : memref<3x128xf32, #tpu.memory_space<vmem>>, vector<1x128xf32>
    %c2 = arith.constant 2 : index
    %6 = arith.index_cast %1 : i32 to index
    %7 = vector.load %arg1[%c2, %6] : memref<3x128xf32, #tpu.memory_space<vmem>>, vector<1x128xf32>
    %c0_0 = arith.constant 0 : index
    %8 = memref.load %arg2[%c0_0] : memref<18xf32, #tpu.memory_space<smem>>
    %9 = vector.broadcast %8 : f32 to vector<1x128xf32>
    %10 = arith.mulf %9, %3 : vector<1x128xf32>
    %c1_1 = arith.constant 1 : index
    %11 = memref.load %arg2[%c1_1] : memref<18xf32, #tpu.memory_space<smem>>
    %12 = vector.broadcast %11 : f32 to vector<1x128xf32>
    %13 = arith.mulf %12, %5 : vector<1x128xf32>
    %14 = arith.addf %10, %13 : vector<1x128xf32>
    %c2_2 = arith.constant 2 : index
    %15 = memref.load %arg2[%c2_2] : memref<18xf32, #tpu.memory_space<smem>>
    %16 = vector.broadcast %15 : f32 to vector<1x128xf32>
    %17 = arith.mulf %16, %7 : vector<1x128xf32>
    %18 = arith.addf %14, %17 : vector<1x128xf32>
    %c0_3 = arith.constant 0 : index
    %19 = memref.load %arg3[%c0_3] : memref<6xf32, #tpu.memory_space<smem>>
    %20 = vector.broadcast %19 : f32 to vector<1x128xf32>
    %21 = arith.addf %18, %20 : vector<1x128xf32>
    %cst = arith.constant 0.000000e+00 : f32
    %22 = vector.broadcast %cst : f32 to vector<1x128xf32>
    %23 = arith.maximumf %21, %22 : vector<1x128xf32>
    %c3 = arith.constant 3 : index
    %24 = memref.load %arg2[%c3] : memref<18xf32, #tpu.memory_space<smem>>
    %25 = vector.broadcast %24 : f32 to vector<1x128xf32>
    %26 = arith.mulf %25, %3 : vector<1x128xf32>
    %c4 = arith.constant 4 : index
    %27 = memref.load %arg2[%c4] : memref<18xf32, #tpu.memory_space<smem>>
    %28 = vector.broadcast %27 : f32 to vector<1x128xf32>
    %29 = arith.mulf %28, %5 : vector<1x128xf32>
    %30 = arith.addf %26, %29 : vector<1x128xf32>
    %c5 = arith.constant 5 : index
    %31 = memref.load %arg2[%c5] : memref<18xf32, #tpu.memory_space<smem>>
    %32 = vector.broadcast %31 : f32 to vector<1x128xf32>
    %33 = arith.mulf %32, %7 : vector<1x128xf32>
    %34 = arith.addf %30, %33 : vector<1x128xf32>
    %c1_4 = arith.constant 1 : index
    %35 = memref.load %arg3[%c1_4] : memref<6xf32, #tpu.memory_space<smem>>
    %36 = vector.broadcast %35 : f32 to vector<1x128xf32>
    %37 = arith.addf %34, %36 : vector<1x128xf32>
    %cst_5 = arith.constant 0.000000e+00 : f32
    %38 = vector.broadcast %cst_5 : f32 to vector<1x128xf32>
    %39 = arith.maximumf %37, %38 : vector<1x128xf32>
    %c6 = arith.constant 6 : index
    %40 = memref.load %arg2[%c6] : memref<18xf32, #tpu.memory_space<smem>>
    %41 = vector.broadcast %40 : f32 to vector<1x128xf32>
    %42 = arith.mulf %41, %3 : vector<1x128xf32>
    %c7 = arith.constant 7 : index
    %43 = memref.load %arg2[%c7] : memref<18xf32, #tpu.memory_space<smem>>
    %44 = vector.broadcast %43 : f32 to vector<1x128xf32>
    %45 = arith.mulf %44, %5 : vector<1x128xf32>
    %46 = arith.addf %42, %45 : vector<1x128xf32>
    %c8 = arith.constant 8 : index
    %47 = memref.load %arg2[%c8] : memref<18xf32, #tpu.memory_space<smem>>
    %48 = vector.broadcast %47 : f32 to vector<1x128xf32>
    %49 = arith.mulf %48, %7 : vector<1x128xf32>
    %50 = arith.addf %46, %49 : vector<1x128xf32>
    %c2_6 = arith.constant 2 : index
    %51 = memref.load %arg3[%c2_6] : memref<6xf32, #tpu.memory_space<smem>>
    %52 = vector.broadcast %51 : f32 to vector<1x128xf32>
    %53 = arith.addf %50, %52 : vector<1x128xf32>
    %cst_7 = arith.constant 0.000000e+00 : f32
    %54 = vector.broadcast %cst_7 : f32 to vector<1x128xf32>
    %55 = arith.maximumf %53, %54 : vector<1x128xf32>
    %c9 = arith.constant 9 : index
    %56 = memref.load %arg2[%c9] : memref<18xf32, #tpu.memory_space<smem>>
    %57 = vector.broadcast %56 : f32 to vector<1x128xf32>
    %58 = arith.mulf %57, %3 : vector<1x128xf32>
    %c10 = arith.constant 10 : index
    %59 = memref.load %arg2[%c10] : memref<18xf32, #tpu.memory_space<smem>>
    %60 = vector.broadcast %59 : f32 to vector<1x128xf32>
    %61 = arith.mulf %60, %5 : vector<1x128xf32>
    %62 = arith.addf %58, %61 : vector<1x128xf32>
    %c11 = arith.constant 11 : index
    %63 = memref.load %arg2[%c11] : memref<18xf32, #tpu.memory_space<smem>>
    %64 = vector.broadcast %63 : f32 to vector<1x128xf32>
    %65 = arith.mulf %64, %7 : vector<1x128xf32>
    %66 = arith.addf %62, %65 : vector<1x128xf32>
    %c3_8 = arith.constant 3 : index
    %67 = memref.load %arg3[%c3_8] : memref<6xf32, #tpu.memory_space<smem>>
    %68 = vector.broadcast %67 : f32 to vector<1x128xf32>
    %69 = arith.addf %66, %68 : vector<1x128xf32>
    %cst_9 = arith.constant 0.000000e+00 : f32
    %70 = vector.broadcast %cst_9 : f32 to vector<1x128xf32>
    %71 = arith.maximumf %69, %70 : vector<1x128xf32>
    %c12 = arith.constant 12 : index
    %72 = memref.load %arg2[%c12] : memref<18xf32, #tpu.memory_space<smem>>
    %73 = vector.broadcast %72 : f32 to vector<1x128xf32>
    %74 = arith.mulf %73, %3 : vector<1x128xf32>
    %c13 = arith.constant 13 : index
    %75 = memref.load %arg2[%c13] : memref<18xf32, #tpu.memory_space<smem>>
    %76 = vector.broadcast %75 : f32 to vector<1x128xf32>
    %77 = arith.mulf %76, %5 : vector<1x128xf32>
    %78 = arith.addf %74, %77 : vector<1x128xf32>
    %c14 = arith.constant 14 : index
    %79 = memref.load %arg2[%c14] : memref<18xf32, #tpu.memory_space<smem>>
    %80 = vector.broadcast %79 : f32 to vector<1x128xf32>
    %81 = arith.mulf %80, %7 : vector<1x128xf32>
    %82 = arith.addf %78, %81 : vector<1x128xf32>
    %c4_10 = arith.constant 4 : index
    %83 = memref.load %arg3[%c4_10] : memref<6xf32, #tpu.memory_space<smem>>
    %84 = vector.broadcast %83 : f32 to vector<1x128xf32>
    %85 = arith.addf %82, %84 : vector<1x128xf32>
    %cst_11 = arith.constant 0.000000e+00 : f32
    %86 = vector.broadcast %cst_11 : f32 to vector<1x128xf32>
    %87 = arith.maximumf %85, %86 : vector<1x128xf32>
    %c15 = arith.constant 15 : index
    %88 = memref.load %arg2[%c15] : memref<18xf32, #tpu.memory_space<smem>>
    %89 = vector.broadcast %88 : f32 to vector<1x128xf32>
    %90 = arith.mulf %89, %3 : vector<1x128xf32>
    %c16 = arith.constant 16 : index
    %91 = memref.load %arg2[%c16] : memref<18xf32, #tpu.memory_space<smem>>
    %92 = vector.broadcast %91 : f32 to vector<1x128xf32>
    %93 = arith.mulf %92, %5 : vector<1x128xf32>
    %94 = arith.addf %90, %93 : vector<1x128xf32>
    %c17 = arith.constant 17 : index
    %95 = memref.load %arg2[%c17] : memref<18xf32, #tpu.memory_space<smem>>
    %96 = vector.broadcast %95 : f32 to vector<1x128xf32>
    %97 = arith.mulf %96, %7 : vector<1x128xf32>
    %98 = arith.addf %94, %97 : vector<1x128xf32>
    %c5_12 = arith.constant 5 : index
    %99 = memref.load %arg3[%c5_12] : memref<6xf32, #tpu.memory_space<smem>>
    %100 = vector.broadcast %99 : f32 to vector<1x128xf32>
    %101 = arith.addf %98, %100 : vector<1x128xf32>
    %cst_13 = arith.constant 0.000000e+00 : f32
    %102 = vector.broadcast %cst_13 : f32 to vector<1x128xf32>
    %103 = arith.maximumf %101, %102 : vector<1x128xf32>
    %c0_14 = arith.constant 0 : index
    %104 = memref.load %arg4[%c0_14] : memref<18xf32, #tpu.memory_space<smem>>
    %105 = vector.broadcast %104 : f32 to vector<1x128xf32>
    %106 = arith.mulf %105, %23 : vector<1x128xf32>
    %c1_15 = arith.constant 1 : index
    %107 = memref.load %arg4[%c1_15] : memref<18xf32, #tpu.memory_space<smem>>
    %108 = vector.broadcast %107 : f32 to vector<1x128xf32>
    %109 = arith.mulf %108, %39 : vector<1x128xf32>
    %110 = arith.addf %106, %109 : vector<1x128xf32>
    %c2_16 = arith.constant 2 : index
    %111 = memref.load %arg4[%c2_16] : memref<18xf32, #tpu.memory_space<smem>>
    %112 = vector.broadcast %111 : f32 to vector<1x128xf32>
    %113 = arith.mulf %112, %55 : vector<1x128xf32>
    %114 = arith.addf %110, %113 : vector<1x128xf32>
    %c3_17 = arith.constant 3 : index
    %115 = memref.load %arg4[%c3_17] : memref<18xf32, #tpu.memory_space<smem>>
    %116 = vector.broadcast %115 : f32 to vector<1x128xf32>
    %117 = arith.mulf %116, %71 : vector<1x128xf32>
    %118 = arith.addf %114, %117 : vector<1x128xf32>
    %c4_18 = arith.constant 4 : index
    %119 = memref.load %arg4[%c4_18] : memref<18xf32, #tpu.memory_space<smem>>
    %120 = vector.broadcast %119 : f32 to vector<1x128xf32>
    %121 = arith.mulf %120, %87 : vector<1x128xf32>
    %122 = arith.addf %118, %121 : vector<1x128xf32>
    %c5_19 = arith.constant 5 : index
    %123 = memref.load %arg4[%c5_19] : memref<18xf32, #tpu.memory_space<smem>>
    %124 = vector.broadcast %123 : f32 to vector<1x128xf32>
    %125 = arith.mulf %124, %103 : vector<1x128xf32>
    %126 = arith.addf %122, %125 : vector<1x128xf32>
    %c0_20 = arith.constant 0 : index
    %127 = memref.load %arg5[%c0_20] : memref<3xf32, #tpu.memory_space<smem>>
    %128 = vector.broadcast %127 : f32 to vector<1x128xf32>
    %129 = arith.addf %126, %128 : vector<1x128xf32>
    %cst_21 = arith.constant 0.000000e+00 : f32
    %130 = vector.broadcast %cst_21 : f32 to vector<1x128xf32>
    %131 = arith.maximumf %129, %130 : vector<1x128xf32>
    %c6_22 = arith.constant 6 : index
    %132 = memref.load %arg4[%c6_22] : memref<18xf32, #tpu.memory_space<smem>>
    %133 = vector.broadcast %132 : f32 to vector<1x128xf32>
    %134 = arith.mulf %133, %23 : vector<1x128xf32>
    %c7_23 = arith.constant 7 : index
    %135 = memref.load %arg4[%c7_23] : memref<18xf32, #tpu.memory_space<smem>>
    %136 = vector.broadcast %135 : f32 to vector<1x128xf32>
    %137 = arith.mulf %136, %39 : vector<1x128xf32>
    %138 = arith.addf %134, %137 : vector<1x128xf32>
    %c8_24 = arith.constant 8 : index
    %139 = memref.load %arg4[%c8_24] : memref<18xf32, #tpu.memory_space<smem>>
    %140 = vector.broadcast %139 : f32 to vector<1x128xf32>
    %141 = arith.mulf %140, %55 : vector<1x128xf32>
    %142 = arith.addf %138, %141 : vector<1x128xf32>
    %c9_25 = arith.constant 9 : index
    %143 = memref.load %arg4[%c9_25] : memref<18xf32, #tpu.memory_space<smem>>
    %144 = vector.broadcast %143 : f32 to vector<1x128xf32>
    %145 = arith.mulf %144, %71 : vector<1x128xf32>
    %146 = arith.addf %142, %145 : vector<1x128xf32>
    %c10_26 = arith.constant 10 : index
    %147 = memref.load %arg4[%c10_26] : memref<18xf32, #tpu.memory_space<smem>>
    %148 = vector.broadcast %147 : f32 to vector<1x128xf32>
    %149 = arith.mulf %148, %87 : vector<1x128xf32>
    %150 = arith.addf %146, %149 : vector<1x128xf32>
    %c11_27 = arith.constant 11 : index
    %151 = memref.load %arg4[%c11_27] : memref<18xf32, #tpu.memory_space<smem>>
    %152 = vector.broadcast %151 : f32 to vector<1x128xf32>
    %153 = arith.mulf %152, %103 : vector<1x128xf32>
    %154 = arith.addf %150, %153 : vector<1x128xf32>
    %c1_28 = arith.constant 1 : index
    %155 = memref.load %arg5[%c1_28] : memref<3xf32, #tpu.memory_space<smem>>
    %156 = vector.broadcast %155 : f32 to vector<1x128xf32>
    %157 = arith.addf %154, %156 : vector<1x128xf32>
    %cst_29 = arith.constant 0.000000e+00 : f32
    %158 = vector.broadcast %cst_29 : f32 to vector<1x128xf32>
    %159 = arith.maximumf %157, %158 : vector<1x128xf32>
    %c12_30 = arith.constant 12 : index
    %160 = memref.load %arg4[%c12_30] : memref<18xf32, #tpu.memory_space<smem>>
    %161 = vector.broadcast %160 : f32 to vector<1x128xf32>
    %162 = arith.mulf %161, %23 : vector<1x128xf32>
    %c13_31 = arith.constant 13 : index
    %163 = memref.load %arg4[%c13_31] : memref<18xf32, #tpu.memory_space<smem>>
    %164 = vector.broadcast %163 : f32 to vector<1x128xf32>
    %165 = arith.mulf %164, %39 : vector<1x128xf32>
    %166 = arith.addf %162, %165 : vector<1x128xf32>
    %c14_32 = arith.constant 14 : index
    %167 = memref.load %arg4[%c14_32] : memref<18xf32, #tpu.memory_space<smem>>
    %168 = vector.broadcast %167 : f32 to vector<1x128xf32>
    %169 = arith.mulf %168, %55 : vector<1x128xf32>
    %170 = arith.addf %166, %169 : vector<1x128xf32>
    %c15_33 = arith.constant 15 : index
    %171 = memref.load %arg4[%c15_33] : memref<18xf32, #tpu.memory_space<smem>>
    %172 = vector.broadcast %171 : f32 to vector<1x128xf32>
    %173 = arith.mulf %172, %71 : vector<1x128xf32>
    %174 = arith.addf %170, %173 : vector<1x128xf32>
    %c16_34 = arith.constant 16 : index
    %175 = memref.load %arg4[%c16_34] : memref<18xf32, #tpu.memory_space<smem>>
    %176 = vector.broadcast %175 : f32 to vector<1x128xf32>
    %177 = arith.mulf %176, %87 : vector<1x128xf32>
    %178 = arith.addf %174, %177 : vector<1x128xf32>
    %c17_35 = arith.constant 17 : index
    %179 = memref.load %arg4[%c17_35] : memref<18xf32, #tpu.memory_space<smem>>
    %180 = vector.broadcast %179 : f32 to vector<1x128xf32>
    %181 = arith.mulf %180, %103 : vector<1x128xf32>
    %182 = arith.addf %178, %181 : vector<1x128xf32>
    %c2_36 = arith.constant 2 : index
    %183 = memref.load %arg5[%c2_36] : memref<3xf32, #tpu.memory_space<smem>>
    %184 = vector.broadcast %183 : f32 to vector<1x128xf32>
    %185 = arith.addf %182, %184 : vector<1x128xf32>
    %cst_37 = arith.constant 0.000000e+00 : f32
    %186 = vector.broadcast %cst_37 : f32 to vector<1x128xf32>
    %187 = arith.maximumf %185, %186 : vector<1x128xf32>
    %c0_38 = arith.constant 0 : index
    %188 = memref.load %arg6[%c0_38] : memref<6xf32, #tpu.memory_space<smem>>
    %189 = vector.broadcast %188 : f32 to vector<1x128xf32>
    %190 = arith.mulf %189, %131 : vector<1x128xf32>
    %c1_39 = arith.constant 1 : index
    %191 = memref.load %arg6[%c1_39] : memref<6xf32, #tpu.memory_space<smem>>
    %192 = vector.broadcast %191 : f32 to vector<1x128xf32>
    %193 = arith.mulf %192, %159 : vector<1x128xf32>
    %194 = arith.addf %190, %193 : vector<1x128xf32>
    %c2_40 = arith.constant 2 : index
    %195 = memref.load %arg6[%c2_40] : memref<6xf32, #tpu.memory_space<smem>>
    %196 = vector.broadcast %195 : f32 to vector<1x128xf32>
    %197 = arith.mulf %196, %187 : vector<1x128xf32>
    %198 = arith.addf %194, %197 : vector<1x128xf32>
    %c0_41 = arith.constant 0 : index
    %199 = memref.load %arg7[%c0_41] : memref<2xf32, #tpu.memory_space<smem>>
    %200 = vector.broadcast %199 : f32 to vector<1x128xf32>
    %201 = arith.addf %198, %200 : vector<1x128xf32>
    %c3_42 = arith.constant 3 : index
    %202 = memref.load %arg6[%c3_42] : memref<6xf32, #tpu.memory_space<smem>>
    %203 = vector.broadcast %202 : f32 to vector<1x128xf32>
    %204 = arith.mulf %203, %131 : vector<1x128xf32>
    %c4_43 = arith.constant 4 : index
    %205 = memref.load %arg6[%c4_43] : memref<6xf32, #tpu.memory_space<smem>>
    %206 = vector.broadcast %205 : f32 to vector<1x128xf32>
    %207 = arith.mulf %206, %159 : vector<1x128xf32>
    %208 = arith.addf %204, %207 : vector<1x128xf32>
    %c5_44 = arith.constant 5 : index
    %209 = memref.load %arg6[%c5_44] : memref<6xf32, #tpu.memory_space<smem>>
    %210 = vector.broadcast %209 : f32 to vector<1x128xf32>
    %211 = arith.mulf %210, %187 : vector<1x128xf32>
    %212 = arith.addf %208, %211 : vector<1x128xf32>
    %c1_45 = arith.constant 1 : index
    %213 = memref.load %arg7[%c1_45] : memref<2xf32, #tpu.memory_space<smem>>
    %214 = vector.broadcast %213 : f32 to vector<1x128xf32>
    %215 = arith.addf %212, %214 : vector<1x128xf32>
    %216 = arith.maximumf %201, %215 : vector<1x128xf32>
    %217 = arith.subf %201, %216 : vector<1x128xf32>
    %218 = math.exp %217 : vector<1x128xf32>
    %219 = arith.subf %215, %216 : vector<1x128xf32>
    %220 = math.exp %219 : vector<1x128xf32>
    %221 = arith.addf %218, %220 : vector<1x128xf32>
    %222 = tpu.reciprocal %221 {approx = true} : vector<1x128xf32> -> vector<1x128xf32>
    %223 = arith.mulf %221, %222 : vector<1x128xf32>
    %cst_46 = arith.constant 2.000000e+00 : f32
    %224 = vector.broadcast %cst_46 : f32 to vector<1x128xf32>
    %225 = arith.subf %224, %223 : vector<1x128xf32>
    %226 = arith.mulf %222, %225 : vector<1x128xf32>
    %227 = arith.mulf %218, %226 : vector<1x128xf32>
    %228 = arith.mulf %220, %226 : vector<1x128xf32>
    %229 = tpu.concatenate %227, %228 in 0 : vector<1x128xf32>, vector<1x128xf32> -> vector<2x128xf32>
    %c0_47 = arith.constant 0 : index
    %230 = arith.index_cast %1 : i32 to index
    %231 = vector.load %arg8[%c0_47, %230] : memref<2x128xf32, #tpu.memory_space<vmem>>, vector<2x128xf32>
    tpu.vector_store %arg8[%c0_47, %230], %229 {strides = array<i32>} : memref<2x128xf32, #tpu.memory_space<vmem>>, vector<2x128xf32>,
    %c1_i32 = arith.constant 1 : i32
    return
  }
  func.func @transform_0(%arg0: i32) -> (i32, i32) {
    %c0_i32 = arith.constant 0 : i32
    %c0_i32_0 = arith.constant 0 : i32
    return %c0_i32, %arg0 : i32, i32
  }
  func.func @transform_1(%arg0: i32) -> i32 {
    %c0_i32 = arith.constant 0 : i32
    %c0_i32_0 = arith.constant 0 : i32
    return %c0_i32 : i32
  }
  func.func @transform_2(%arg0: i32) -> i32 {
    %c0_i32 = arith.constant 0 : i32
    %c0_i32_0 = arith.constant 0 : i32
    return %c0_i32 : i32
  }
  func.func @transform_3(%arg0: i32) -> i32 {
    %c0_i32 = arith.constant 0 : i32
    %c0_i32_0 = arith.constant 0 : i32
    return %c0_i32 : i32
  }
  func.func @transform_4(%arg0: i32) -> i32 {
    %c0_i32 = arith.constant 0 : i32
    %c0_i32_0 = arith.constant 0 : i32
    return %c0_i32 : i32
  }
  func.func @transform_5(%arg0: i32) -> i32 {
    %c0_i32 = arith.constant 0 : i32
    %c0_i32_0 = arith.constant 0 : i32
    return %c0_i32 : i32
  }
  func.func @transform_6(%arg0: i32) -> i32 {
    %c0_i32 = arith.constant 0 : i32
    %c0_i32_0 = arith.constant 0 : i32
    return %c0_i32 : i32
  }
  func.func @transform_7(%arg0: i32) -> (i32, i32) {
    %c0_i32 = arith.constant 0 : i32
    %c0_i32_0 = arith.constant 0 : i32
    return %c0_i32, %arg0 : i32, i32
  }
}

</mosaic_0001>

<bundles_post_ra>
// kernel: tpu_custom_call.1
= control target key start
LH: loop header
LB: loop body
LE: loop exit
PB: predicated region body
PF: predicated region fallthrough
CT: control target
= control target key end

     0   :  { %12 = vsyncpa [#allocation3], 0  ;;  %s711_s0 = inlined_call_operand.hbm [shape: f32[3,5], index: 0, kind: input, shape index: {}]   ;;  %s712_s1 = inlined_call_operand.hbm [shape: f32[18], index: 1, kind: input, shape index: {}]   ;;  %s713_s2 = inlined_call_operand.vmem [shape: f32[6], index: 2, kind: input, shape index: {}]   ;;  %s714_s3 = inlined_call_operand.vmem [shape: f32[18], index: 3, kind: input, shape index: {}]   ;;  %s715_s4 = inlined_call_operand.vmem [shape: f32[3], index: 4, kind: input, shape index: {}]   ;;  %s716_s5 = inlined_call_operand.vmem [shape: f32[6], index: 5, kind: input, shape index: {}]   ;;  %s717_s6 = inlined_call_operand.vmem [shape: f32[2], index: 6, kind: input, shape index: {}]   ;;  %s718_s7 = inlined_call_operand.hbm [shape: f32[2,5], index: 7, kind: output, shape index: {}]  }
   0x1   :  { %13 = vsyncpa [#allocation5], 0 }
   0x2   :  { %14 = vsyncpa [#allocation6], 0 }
   0x3   :  { %15 = vsyncpa [#allocation10], 0 }
   0x4   :  { %16 = vsyncpa [#allocation13], 0  ;;  %s52_s26 = sshll.u32 %s714_s3, 4  ;;  %s53_s26 = int_to_ptr.vmem [resolvable:$true] %s52_s26 }
   0x5   :  { %17 = vsyncpa [#allocation4], 0  ;;  %s70_s29 = sshll.u32 %s716_s5, 4  ;;  %s548_s30 = smov [#allocation9]   ;;  %s71_s29 = int_to_ptr.vmem [resolvable:$true] %s70_s29 }
   0x6   :  { %55 = dma.vmem_to_smem %s53_s26, 16, %s548_s30, [#allocation10]  }
   0x7   :  { %s549_s8 = smov [#allocation12]   ;;  %s23_s11 = sshll.u32 %s711_s0, 4  ;;  %s24_s11 = int_to_ptr.hbm [resolvable:$true] %s23_s11 }
   0x8   :  { %73 = dma.vmem_to_smem %s71_s29, 16, %s549_s8, [#allocation13]  }
   0x9   :  { %s550_s12 = smov [#allocation2]   ;;  %s34_s15 = sshll.u32 %s712_s1, 4  ;;  %s35_s15 = int_to_ptr.hbm [resolvable:$true] %s34_s15 }
   0xa   :  { %s25_s13 = sshll.u32 %s550_s12, 4  ;;  %s551_s5 = smov [#allocation7]   ;;  %s26_s13 = int_to_ptr.vmem [resolvable:$true] %s25_s13 }
   0xb   :  { %28 = dma.hbm_to_vmem [thread:$0]  %s24_s11, 64, %s26_s13, [#allocation3]  }
   0xc   :  { %37 = dma.hbm_to_smem %s35_s15, 16, %s551_s5, [#allocation5]  }
   0xd   :  { %s43_s18 = sshll.u32 %s713_s2, 4  ;;  %s61_s0 = sshll.u32 %s715_s4, 4  ;;  %s44_s18 = int_to_ptr.vmem [resolvable:$true] %s43_s18  ;;  %s62_s0 = int_to_ptr.vmem [resolvable:$true] %s61_s0 }
   0xe   :  { %s552_s21 = smov [#allocation8]   ;;  %s553_s22 = smov [#allocation11]  }
   0xf   :  { %46 = dma.vmem_to_smem %s44_s18, 16, %s552_s21, [#allocation6]  }
  0x10   :  { %64 = dma.vmem_to_smem %s62_s0, 16, %s553_s22, [#allocation10]  }
  0x11   :  { %s79_s24 = sshll.u32 %s717_s6, 4  ;;  %s554_s25 = smov [#allocation14]   ;;  %s80_s24 = int_to_ptr.vmem [resolvable:$true] %s79_s24 }
  0x12   :  { %82 = dma.vmem_to_smem %s80_s24, 16, %s554_s25, [#allocation13]  }
  0x13   :  { %536 = dma.done.wait [#allocation3], 64  }
  0x14   :  { %537 = vsyncadd [#allocation3], 4294967232 }
  0x15   :  { %538 = dma.done.wait [#allocation5], 16  }
  0x16   :  { %539 = vsyncadd [#allocation5], 4294967280 }
  0x17   :  { %540 = dma.done.wait [#allocation6], 16  }
  0x18   :  { %541 = vsyncadd [#allocation6], 4294967280 }
  0x19   :  { %542 = dma.done.wait [#allocation10], 32  }
  0x1a   :  { %543 = vsyncadd [#allocation10], 4294967264 }
  0x1b   :  { %544 = dma.done.wait [#allocation13], 32  }
  0x1c   :  { %545 = vsyncadd [#allocation13], 4294967264 }
  0x1d   :  { %111 = sfence }
  0x1e   :  { %s115_s2 = sld [smem:[#allocation7]]  ;;  %v621_v0 = vld [vmem:[#allocation2] sm:$0x1]  ;;  %v623_v1 = vld [vmem:[#allocation2 + $0x1] sm:$0x1]  ;;  %vm331_vm0 = vcmask 1040384  }
  0x1f   :  { %s355_s4 = sld [smem:[#allocation7 + $0x1]]  ;;  %v629_v8 = vld [vmem:[#allocation2 + $0x2] sm:$0x1] }
  0x20   :  { %s356_s26 = sld [smem:[#allocation7 + $0x2]] }
  0x21   :  { %s617_s27 = sld [smem:[#allocation8]] }
  0x22   :  { %s357_s6 = sld [smem:[#allocation7 + $0x3]] }
  0x23   :  { %s358_s28 = sld [smem:[#allocation7 + $0x4]] }
  0x24   :  { %s359_s29 = sld [smem:[#allocation7 + $0x5]]  ;;  %v116_v2 = vstv %s115_s2 }
  0x25   :  { %s619_s30 = sld [smem:[#allocation8 + $0x1]]  ;;  %v119_v3 = vstv %s355_s4  ;;  %v117_v5 = vmul.f32 %v116_v2, %v621_v0 }
  0x26   :  { %s361_s8 = sld [smem:[#allocation7 + $0x6]]  ;;  %v120_v6 = vmul.f32 %v119_v3, %v623_v1  ;;  %v123_v9 = vstv %s356_s26 }
  0x27   :  { %s362_s9 = sld [smem:[#allocation7 + $0x7]]  ;;  %v124_v15 = vmul.f32 %v123_v9, %v629_v8  ;;  %v127_v28 = vstv %s617_s27 }
  0x28   :  { %v131_v4 = vstv %s357_s6  ;;  %s363_s10 = sld [smem:[#allocation7 + $0x8]]  ;;  %v121_v14 = vadd.f32 %v120_v6, %v117_v5 }
  0x29   :  { %v134_v7 = vstv %s358_s28  ;;  %s627_s11 = sld [smem:[#allocation8 + $0x2]]  ;;  %v132_v10 = vmul.f32 %v131_v4, %v621_v0 }
  0x2a   :  { %v135_v11 = vmul.f32 %v134_v7, %v623_v1  ;;  %s365_s12 = sld [smem:[#allocation7 + $0x9]]  ;;  %v138_v12 = vstv %s359_s29  ;;  %v125_v25 = vadd.f32 %v124_v15, %v121_v14 }
  0x2b   :  { %s366_s13 = sld [smem:[#allocation7 + $0xa]]  ;;  %v139_v19 = vmul.f32 %v138_v12, %v629_v8  ;;  %v142_v32 = vstv %s619_s30 }
  0x2c   :  { %v146_v13 = vstv %s361_s8  ;;  %s367_s3 = sld [smem:[#allocation7 + $0xb]]  ;;  %v136_v18 = vadd.f32 %v135_v11, %v132_v10  ;;  %v128_v38 = vadd.f32 %v127_v28, %v125_v25 }
  0x2d   :  { %v147_v16 = vmul.f32 %v146_v13, %v621_v0  ;;  %v149_v17 = vstv %s362_s9  ;;  %s635_s14 = sld [smem:[#allocation8 + $0x3]] }
  0x2e   :  { %v150_v20 = vmul.f32 %v149_v17, %v623_v1  ;;  %v153_v21 = vstv %s363_s10  ;;  %s369_s15 = sld [smem:[#allocation7 + $0xc]]  ;;  %v140_v29 = vadd.f32 %v139_v19, %v136_v18  ;;  %v654_v51 = vmax.f32 %v128_v38, 0.0 }
  0x2f   :  { %v154_v22 = vmul.f32 %v153_v21, %v629_v8  ;;  %s370_s5 = sld [smem:[#allocation7 + $0xd]]  ;;  %v157_v35 = vstv %s627_s11 }
  0x30   :  { %v151_v23 = vadd.f32 %v150_v20, %v147_v16  ;;  %v161_v24 = vstv %s365_s12  ;;  %s371_s16 = sld [smem:[#allocation7 + $0xe]]  ;;  %v143_v42 = vadd.f32 %v142_v32, %v140_v29 }
  0x31   :  { %v162_v26 = vmul.f32 %v161_v24, %v621_v0  ;;  %v164_v27 = vstv %s366_s13  ;;  %s641_s17 = sld [smem:[#allocation8 + $0x4]] }
  0x32   :  { %v165_v30 = vmul.f32 %v164_v27, %v623_v1  ;;  %v168_v31 = vstv %s367_s3  ;;  %s373_s18 = sld [smem:[#allocation7 + $0xf]]  ;;  %v155_v33 = vadd.f32 %v154_v22, %v151_v23  ;;  %v658_v55 = vmax.f32 %v143_v42, 0.0 }
  0x33   :  { %v169_v34 = vmul.f32 %v168_v31, %v629_v8  ;;  %s374_s19 = sld [smem:[#allocation7 + $0x10]]  ;;  %v172_v39 = vstv %s635_s14 }
  0x34   :  { %v166_v36 = vadd.f32 %v165_v30, %v162_v26  ;;  %v176_v37 = vstv %s369_s15  ;;  %s375_s20 = sld [smem:[#allocation7 + $0x11]]  ;;  %v158_v46 = vadd.f32 %v157_v35, %v155_v33 }
  0x35   :  { %v177_v40 = vmul.f32 %v176_v37, %v621_v0  ;;  %v179_v41 = vstv %s370_s5  ;;  %s650_s0 = sld [smem:[#allocation8 + $0x5]] }
  0x36   :  { %v170_v43 = vadd.f32 %v169_v34, %v166_v36  ;;  %v180_v44 = vmul.f32 %v179_v41, %v623_v1  ;;  %v183_v45 = vstv %s371_s16  ;;  %s205_s21 = sld [smem:[#allocation9]]  ;;  %v661_v59 = vmax.f32 %v158_v46, 0.0 }
  0x37   :  { %v184_v47 = vmul.f32 %v183_v45, %v629_v8  ;;  %s377_s22 = sld [smem:[#allocation9 + $0x1]]  ;;  %v187_v52 = vstv %s641_s17 }
  0x38   :  { %v173_v48 = vadd.f32 %v172_v39, %v170_v43  ;;  %v181_v49 = vadd.f32 %v180_v44, %v177_v40  ;;  %v191_v50 = vstv %s373_s18  ;;  %s378_s23 = sld [smem:[#allocation9 + $0x2]] }
  0x39   :  { %v192_v53 = vmul.f32 %v191_v50, %v621_v0  ;;  %v194_v54 = vstv %s374_s19  ;;  %s379_s1 = sld [smem:[#allocation9 + $0x3]] }
  0x3a   :  { %v185_v56 = vadd.f32 %v184_v47, %v181_v49  ;;  %v195_v57 = vmul.f32 %v194_v54, %v623_v1  ;;  %v198_v58 = vstv %s375_s20  ;;  %s380_s24 = sld [smem:[#allocation9 + $0x4]]  ;;  %v666_v61 = vmax.f32 %v173_v48, 0.0 }
  0x3b   :  { %v199_v60 = vmul.f32 %v198_v58, %v629_v8  ;;  %s664_s25 = sld [smem:[#allocation9 + $0x5]]  ;;  %v202_v2 = vstv %s650_s0  ;;  %s555_s0 = smov [#allocation15]  }
  0x3c   :  { %v188_v62 = vadd.f32 %v187_v52, %v185_v56  ;;  %v196_v63 = vadd.f32 %v195_v57, %v192_v53  ;;  %v206_v0 = vstv %s205_s21  ;;  %s668_s2 = sld [smem:[#allocation11]]  ;;  %s339_s21 = sshll.u32 %s555_s0, 4  ;;  %s340_s21 = int_to_ptr.vmem [resolvable:$true] %s339_s21 }
  0x3d   :  { %v207_v3 = vmul.f32 %v206_v0, %v654_v51  ;;  %v209_v4 = vstv %s377_s22  ;;  %s382_s4 = sld [smem:[#allocation9 + $0x6]] }
  0x3e   :  { %v672_v1 = vmax.f32 %v188_v62, 0.0  ;;  %v200_v5 = vadd.f32 %v199_v60, %v196_v63  ;;  %v210_v6 = vmul.f32 %v209_v4, %v658_v55  ;;  %v213_v7 = vstv %s378_s23  ;;  %s383_s26 = sld [smem:[#allocation9 + $0x7]] }
  0x3f   :  { %v214_v8 = vmul.f32 %v213_v7, %v661_v59  ;;  %v217_v9 = vstv %s379_s1  ;;  %s384_s27 = sld [smem:[#allocation9 + $0x8]]  ;;  %s341_s1 = sshll.u32 %s718_s7, 4  ;;  %s342_s1 = int_to_ptr.hbm [resolvable:$true] %s341_s1 }
  0x40   :  { %v203_v10 = vadd.f32 %v202_v2, %v200_v5  ;;  %v211_v11 = vadd.f32 %v210_v6, %v207_v3  ;;  %v218_v12 = vmul.f32 %v217_v9, %v666_v61  ;;  %v221_v13 = vstv %s380_s24  ;;  %s385_s6 = sld [smem:[#allocation9 + $0x9]] }
  0x41   :  { %s386_s28 = sld [smem:[#allocation9 + $0xa]]  ;;  %v222_v16 = vmul.f32 %v221_v13, %v672_v1  ;;  %v225_v17 = vstv %s664_s25 }
  0x42   :  { %v204_v14 = vmax.f32 %v203_v10, 0.0  ;;  %v215_v15 = vadd.f32 %v214_v8, %v211_v11  ;;  %s387_s29 = sld [smem:[#allocation9 + $0xb]]  ;;  %v229_v35 = vstv %s668_s2 }
  0x43   :  { %v233_v18 = vstv %s382_s4  ;;  %s679_s30 = sld [smem:[#allocation11 + $0x1]] }
  0x44   :  { %v219_v19 = vadd.f32 %v218_v12, %v215_v15  ;;  %v234_v20 = vmul.f32 %v233_v18, %v654_v51  ;;  %v236_v21 = vstv %s383_s26  ;;  %s389_s8 = sld [smem:[#allocation9 + $0xc]]  ;;  %v226_v22 = vmul.f32 %v225_v17, %v204_v14 }
  0x45   :  { %v237_v23 = vmul.f32 %v236_v21, %v658_v55  ;;  %v240_v24 = vstv %s384_s27  ;;  %s390_s9 = sld [smem:[#allocation9 + $0xd]] }
  0x46   :  { %v223_v25 = vadd.f32 %v222_v16, %v219_v19  ;;  %v241_v26 = vmul.f32 %v240_v24, %v661_v59  ;;  %v244_v27 = vstv %s385_s6  ;;  %s391_s10 = sld [smem:[#allocation9 + $0xe]] }
  0x47   :  { %v238_v28 = vadd.f32 %v237_v23, %v234_v20  ;;  %v245_v29 = vmul.f32 %v244_v27, %v666_v61  ;;  %v248_v30 = vstv %s386_s28  ;;  %s392_s11 = sld [smem:[#allocation9 + $0xf]] }
  0x48   :  { %v252_v31 = vstv %s387_s29  ;;  %s393_s12 = sld [smem:[#allocation9 + $0x10]]  ;;  %v227_v32 = vadd.f32 %v226_v22, %v223_v25  ;;  %v249_v34 = vmul.f32 %v248_v30, %v672_v1 }
  0x49   :  { %v242_v33 = vadd.f32 %v241_v26, %v238_v28  ;;  %s686_s13 = sld [smem:[#allocation9 + $0x11]]  ;;  %v253_v38 = vmul.f32 %v252_v31, %v204_v14  ;;  %v256_v47 = vstv %s679_s30 }
  0x4a   :  { %v260_v36 = vstv %s389_s8  ;;  %s690_s3 = sld [smem:[#allocation12]]  ;;  %v230_v43 = vadd.f32 %v229_v35, %v227_v32 }
  0x4b   :  { %v246_v37 = vadd.f32 %v245_v29, %v242_v33  ;;  %v261_v39 = vmul.f32 %v260_v36, %v654_v51  ;;  %v263_v40 = vstv %s390_s9  ;;  %s693_s14 = sld [smem:[#allocation12 + $0x1]] }
  0x4c   :  { %v264_v41 = vmul.f32 %v263_v40, %v658_v55  ;;  %v267_v42 = vstv %s391_s10  ;;  %s696_s15 = sld [smem:[#allocation11 + $0x2]]  ;;  %v231_v55 = vmax.f32 %v230_v43, 0.0 }
  0x4d   :  { %v250_v44 = vadd.f32 %v249_v34, %v246_v37  ;;  %v268_v45 = vmul.f32 %v267_v42, %v661_v59  ;;  %v271_v46 = vstv %s392_s11  ;;  %s700_s5 = sld [smem:[#allocation12 + $0x2]] }
  0x4e   :  { %v265_v48 = vadd.f32 %v264_v41, %v261_v39  ;;  %v272_v49 = vmul.f32 %v271_v46, %v666_v61  ;;  %v275_v50 = vstv %s393_s12  ;;  %s398_s16 = sld [smem:[#allocation12 + $0x3]] }
  0x4f   :  { %v254_v51 = vadd.f32 %v253_v38, %v250_v44  ;;  %v279_v52 = vstv %s686_s13  ;;  %v276_v54 = vmul.f32 %v275_v50, %v672_v1  ;;  %s399_s17 = sld [smem:[#allocation12 + $0x4]] }
  0x50   :  { %v269_v53 = vadd.f32 %v268_v45, %v265_v48  ;;  %s400_s18 = sld [smem:[#allocation12 + $0x5]]  ;;  %v280_v58 = vmul.f32 %v279_v52, %v204_v14  ;;  %v287_v59 = vstv %s690_s3 }
  0x51   :  { %v257_v56 = vadd.f32 %v256_v47, %v254_v51  ;;  %v290_v61 = vstv %s693_s14  ;;  %s297_s19 = sld [smem:[#allocation14]]  ;;  %v288_v0 = vmul.f32 %v287_v59, %v231_v55 }
  0x52   :  { %v273_v57 = vadd.f32 %v272_v49, %v269_v53  ;;  %v283_v63 = vstv %s696_s15  ;;  %s401_s20 = sld [smem:[#allocation14 + $0x1]] }
  0x53   :  { %v258_v60 = vmax.f32 %v257_v56, 0.0  ;;  %v294_v8 = vstv %s700_s5 }
  0x54   :  { %v277_v62 = vadd.f32 %v276_v54, %v273_v57  ;;  %v301_v2 = vstv %s398_s16 }
  0x55   :  { %v291_v4 = vmul.f32 %v290_v61, %v258_v60  ;;  %v302_v5 = vmul.f32 %v301_v2, %v231_v55  ;;  %v304_v1 = vstv %s399_s17 }
  0x56   :  { %v281_v3 = vadd.f32 %v280_v58, %v277_v62  ;;  %v305_v6 = vmul.f32 %v304_v1, %v258_v60  ;;  %v308_v9 = vstv %s400_s18 }
  0x57   :  { %v292_v11 = vadd.f32 %v291_v4, %v288_v0  ;;  %v298_v15 = vstv %s297_s19 }
  0x58   :  { %v284_v7 = vadd.f32 %v283_v63, %v281_v3  ;;  %v306_v12 = vadd.f32 %v305_v6, %v302_v5  ;;  %v312_v16 = vstv %s401_s20 }
  0x5a   :  { %v285_v10 = vmax.f32 %v284_v7, 0.0 }
  0x5c   :  { %v295_v13 = vmul.f32 %v294_v8, %v285_v10  ;;  %v309_v14 = vmul.f32 %v308_v9, %v285_v10 }
  0x5e   :  { %v296_v17 = vadd.f32 %v295_v13, %v292_v11  ;;  %v310_v18 = vadd.f32 %v309_v14, %v306_v12 }
  0x60   :  { %v299_v19 = vadd.f32 %v298_v15, %v296_v17  ;;  %v313_v20 = vadd.f32 %v312_v16, %v310_v18 }
  0x62   :  { %v314_v21 = vmax.f32 %v299_v19, %v313_v20 }
  0x64   :  { %v315_v22 = vsub.f32 %v299_v19, %v314_v21  ;;  %v318_v23 = vsub.f32 %v313_v20, %v314_v21 }
  0x66   :  { %v316_v24 = vmul.f32 1.442695, %v315_v22  ;;  %v319_v25 = vmul.f32 1.442695, %v318_v23 }
  0x68   :  { %410 = vpow2.f32 %v316_v24 }
  0x69   :  { %412 = vpow2.f32 %v319_v25 }
  0x6e   :  { %v411_v26 = vpop.eup %410 }
  0x6f   :  { %v413_v27 = vpop.eup %412 }
  0x70   :  { %v321_v28 = vadd.f32 %v413_v27, %v411_v26 }
  0x72   :  { %414 = vrcp.f32 %v321_v28 }
  0x78   :  { %v415_v29 = vpop.eup %414 }
  0x79   :  { %v323_v30 = vmul.f32 %v415_v29, %v321_v28 }
  0x7b   :  { %v324_v31 = vsub.f32 2.0, %v323_v30 }
  0x7d   :  { %v325_v32 = vmul.f32 %v415_v29, %v324_v31 }
  0x7f   :  { %v326_v33 = vmul.f32 %v411_v26, %v325_v32  ;;  %v327_v34 = vmul.f32 %v413_v27, %v325_v32 }
  0x81   :  { %v329_v35 = vrot.slane %v327_v34, 7 }
  0x83   :  { %v332_v36 = vsel %vm331_vm0, %v326_v33, %v329_v35 }
  0x84   :  { %333 = vst [vmem:[#allocation15] sm:$0x3] %v332_v36 }
  0x85   :  { %344 = dma.vmem_to_hbm [thread:$0]  %s340_s21, 32, %s342_s1, [#allocation4]  }
  0x86   :  { %546 = dma.done.wait [#allocation4], 32  }
  0x87   :  { %547 = vsyncadd [#allocation4], 4294967264 }
  0x88   :  { %349 = vsyncpa [#allocation3], 1 }
  0x89   :  { %350 = vsyncpa [#allocation4], 1 }
  0x8a   :  { %351 = vsyncpa [#allocation5], 1 }
  0x8b   :  { %352 = vsyncpa [#allocation6], 1 }
  0x8c   :  { %353 = vsyncpa [#allocation10], 1 }
  0x8d   :  { %354 = vsyncpa [#allocation13], 1 }

</bundles_post_ra>
